<compile_context>
chip_gen: v6e
topology: v6e:2x2x1
jax: 0.10.0
libtpu: 0.0.40
codegen_flags: <defaults>
</compile_context>

<pallas_src>
import functools
import math

import jax
import jax.numpy as jnp
import numpy as np
from jax import lax
from jax.experimental import pallas as pl
from jax.experimental.pallas import tpu as pltpu


def _astar_kernel(idx_ref, cost_smem_ref, cost_ref, packed_ref, hist_out, path_out,
                  *, g_ratio, tmax_steps):
    N = packed_ref.shape[0]
    start = idx_ref[0]
    goal = idx_ref[1]

    lane = jax.lax.broadcasted_iota(jnp.int32, (1, N), 1)   # node id along lanes

    goal_maps = (lane == goal).astype(jnp.float32)
    h_scaled = (1.0 - g_ratio) * cost_ref[...]               # (1, N), loop-invariant

    open0 = (lane == start).astype(jnp.float32)
    hist0 = jnp.zeros((1, N), jnp.float32)
    row0 = packed_ref[pl.ds(start, 1), :]                     # [adj[start] | wadj[start]]
    g0 = row0[:, N:]                                          # weighted_adj[start]
    par0 = jnp.zeros((1, N), jnp.float32) + goal.astype(jnp.float32)

    def cond_fn(carry):
        t, _open, _hist, _g, _par, solved = carry
        return jnp.logical_and(t < tmax_steps, jnp.logical_not(solved))

    def body_fn(carry):
        t, open_m, hist_m, g, par, _ = carry

        f = g_ratio * g + h_scaled

        # Selection: first argmin of f over the open set.
        # Equivalent to argmax(exp(-f/sqrt(N)) * open) except when exp underflows
        # for every open node (reference then degenerates to node 0).
        masked_f = jnp.where(open_m > 0.0, f, jnp.inf)
        fmin = jnp.min(masked_f)
        sel = jnp.min(jnp.where(masked_f == fmin, lane, N)).astype(jnp.int32)
        snm = (lane == sel).astype(jnp.float32)

        solved = sel == goal                                  # scalar compare

        open_n = open_m * (1.0 - snm)                         # == clip(open - snm, 0, 1)
        hist_n = jnp.maximum(hist_m, snm)                     # == clip(hist + snm, 0, 1)

        row = packed_ref[pl.ds(sel, 1), :]                    # one row load per step
        adj_row = row[:, :N]                                  # adj[sel]          (1, N)
        wadj_row = row[:, N:]                                 # weighted_adj[sel] (1, N)

        if g_ratio > 0.0:
            # g[sel] on the scalar unit: fmin == g_ratio*g[sel] + (1-g_ratio)*h[sel]
            h_sel = cost_smem_ref[sel]
            g_sel = (fmin - (1.0 - g_ratio) * h_sel) * (1.0 / g_ratio)
        else:
            g_sel = jnp.sum(g * snm)                          # fallback: exact reduce

        neighbor = adj_row * (1.0 - open_n) * (1.0 - hist_n)
        g2 = g_sel + wadj_row

        idx = (1.0 - open_n) * (1.0 - hist_n) + open_n * (g > g2).astype(jnp.float32)
        idx = idx * neighbor                                  # idx in {0, 1}

        upd = idx > 0.0
        g_n = jnp.where(upd, g2, g)
        open_n = jnp.maximum(open_n, idx)
        par_n = jnp.where(upd, sel.astype(jnp.float32), par)

        return t + 1, open_n, hist_n, g_n, par_n, solved

    carry0 = (jnp.int32(0), open0, hist0, g0, par0, jnp.array(False))
    t_end, _open, hist_m, _g, par, _solved = lax.while_loop(cond_fn, body_fn, carry0)

    # --- backtrack(start_maps, goal_maps, parents, t) ---
    # PyTorch's `t` at break time == (#iterations run) - 1 == t_end - 1.
    bt_steps = jnp.maximum(t_end - 1, 0)
    path0 = goal_maps.astype(jnp.int32)
    loc0 = jnp.sum(par * goal_maps).astype(jnp.int32)         # parents[goal_index]

    def bt_cond(carry):
        i, _path, _loc = carry
        return i < bt_steps

    def bt_body(carry):
        i, path, loc = carry
        onehot = lane == loc
        path = jnp.where(onehot, 1, path)
        loc = jnp.sum(jnp.where(onehot, par, 0.0)).astype(jnp.int32)  # parents[loc]
        return i + 1, path, loc

    _, path, _ = lax.while_loop(bt_cond, bt_body, (jnp.int32(0), path0, loc0))

    hist_out[...] = hist_m
    path_out[...] = path


def differentiable_astar(start_index, goal_index, cost_maps, nodes, adj, weighted_adj,
                         g_ratio=0.5, Tmax=0.25):
    """Training-mode forward of DifferentiableAstar. Returns (histories, path_maps)."""
    N = nodes.shape[0]
    tmax_steps = int(Tmax * N)
    idx = jnp.array([start_index, goal_index], dtype=jnp.int32)
    cost1d = jnp.asarray(cost_maps, jnp.float32).reshape(N)
    cost2d = cost1d.reshape(1, N)

    # Module preprocessing done once in the wrapper:
    #   adj.fill_diagonal_(0); weighted_adj[inf] = 0; weighted_adj diag = 0
    # then adj||weighted_adj packed into one (N, 2N) buffer so the kernel does a
    # single dynamic row load per step.
    diag = jnp.eye(N, dtype=bool)
    adj_c = jnp.where(diag, 0.0, jnp.asarray(adj, jnp.float32))
    wadj = jnp.asarray(weighted_adj, jnp.float32)
    wadj = jnp.where(wadj == jnp.inf, 0.0, wadj)
    wadj_c = jnp.where(diag, 0.0, wadj)
    packed = jnp.concatenate([adj_c, wadj_c], axis=1)          # (N, 2N)

    kernel = functools.partial(_astar_kernel, g_ratio=float(g_ratio),
                               tmax_steps=tmax_steps)

    # Only the (N, 2N) packed matrix + a handful of (1, N) vectors live in VMEM
    # (no grid -> no double buffering).  Set the scoped limit unconditionally:
    # v5e's default is 16 MiB (v6e/v7x: 32 MiB).
    vmem_need = 2 * N * N * 4 + 64 * N * 4 + (1 << 20)
    vmem_limit = int(min(max(vmem_need, 32 << 20), 100 << 20))

    hist, path = pl.pallas_call(
        kernel,
        out_shape=(jax.ShapeDtypeStruct((1, N), jnp.float32),
                   jax.ShapeDtypeStruct((1, N), jnp.int32)),
        in_specs=[
            pl.BlockSpec(memory_space=pltpu.MemorySpace.SMEM),   # [start, goal]
            pl.BlockSpec(memory_space=pltpu.MemorySpace.SMEM),   # cost (N,) for scalar h[sel]
            pl.BlockSpec(memory_space=pltpu.MemorySpace.VMEM),   # cost (1, N)
            pl.BlockSpec(memory_space=pltpu.MemorySpace.VMEM),   # packed adj||wadj (N, 2N)
        ],
        out_specs=(
            pl.BlockSpec(memory_space=pltpu.MemorySpace.VMEM),
            pl.BlockSpec(memory_space=pltpu.MemorySpace.VMEM),
        ),
        compiler_params=pltpu.CompilerParams(vmem_limit_bytes=vmem_limit),
    )(idx, cost1d, cost2d, packed)

    return hist.reshape(N), path.reshape(N)


# ----------------------------- numpy reference ------------------------------
def _reference(start, goal, cost, adj, wadj, g_ratio=0.5, Tmax_ratio=0.25):
    cost = np.asarray(cost, np.float32)
    adj = np.asarray(adj, np.float32).copy()
    wadj = np.asarray(wadj, np.float32).copy()
    N = cost.shape[0]
    np.fill_diagonal(adj, 0)
    wadj[wadj == np.inf] = 0
    np.fill_diagonal(wadj, 0)

    open_m = np.zeros(N, np.float32); open_m[start] = 1
    goal_m = np.zeros(N, np.float32); goal_m[goal] = 1
    hist = np.zeros(N, np.float32)
    h = cost
    g = wadj[start].copy()
    parents = np.full(N, float(goal), np.float32)
    Tmax = int(Tmax_ratio * N)
    t = 0
    for t in range(Tmax):
        f = g_ratio * g + (1.0 - g_ratio) * h
        f_exp = np.exp(-f / math.sqrt(N)).astype(np.float32) * open_m
        sel = int(np.argmax(f_exp))
        snm = np.zeros(N, np.float32); snm[sel] = 1
        dist_to_goal = float((snm * goal_m).sum())
        is_unsolved = float(dist_to_goal < 1e-8)
        open_m = np.clip(open_m - snm, 0, 1)
        hist = np.clip(hist + snm, 0, 1)
        neighbor = adj[sel] * (1 - open_m) * (1 - hist)
        g2 = np.float32(g[sel]) + wadj[sel]
        idx = (1 - open_m) * (1 - hist) + open_m * (g > g2).astype(np.float32)
        idx = idx * neighbor
        g = g2 * idx + g * (1 - idx)
        open_m = np.clip(open_m + idx, 0, 1)
        parents = np.float32(sel) * idx + parents * (1 - idx)
        if is_unsolved == 0:
            break
    parents_l = parents.astype(np.int64)
    path = goal_m.astype(np.int64)
    loc = int((parents_l * goal_m.astype(np.int64)).sum())
    for _ in range(t):
        path[loc] = 1
        loc = int(parents_l[loc])
    return hist, path.astype(np.int32)


if __name__ == "__main__":
    key = jax.random.PRNGKey(0)
    N = 128
    k1, k2 = jax.random.split(key, 2)

    nodes = jax.random.uniform(k1, (N, 2), jnp.float32)

    # random sparse symmetric adjacency + ring (guarantees connectivity)
    ii = jnp.arange(N)
    ring = ((jnp.abs(ii[:, None] - ii[None, :]) == 1) |
            (jnp.abs(ii[:, None] - ii[None, :]) == N - 1)).astype(jnp.float32)
    rnd = (jax.random.uniform(k2, (N, N)) < 0.05).astype(jnp.float32)
    adj = jnp.clip(jnp.maximum(ring, jnp.maximum(rnd, rnd.T)), 0.0, 1.0)

    dist = jnp.sqrt(jnp.sum((nodes[:, None, :] - nodes[None, :, :]) ** 2, axis=-1))
    weighted_adj = jnp.where(adj > 0, dist, jnp.inf).astype(jnp.float32)

    start_index = 0
    goal_index = 37
    cost_maps = jnp.sqrt(jnp.sum((nodes - nodes[goal_index]) ** 2, axis=-1)).astype(jnp.float32)

    histories, path_maps = differentiable_astar(
        start_index, goal_index, cost_maps, nodes, adj, weighted_adj)
    histories = jax.block_until_ready(histories)
    path_maps = jax.block_until_ready(path_maps)

    ref_hist, ref_path = _reference(start_index, goal_index,
                                    np.asarray(cost_maps), np.asarray(adj),
                                    np.asarray(weighted_adj))
    np.testing.assert_allclose(np.asarray(histories), ref_hist, atol=1e-6)
    assert np.array_equal(np.asarray(path_maps), ref_path)

    print("KERNEL_OK")
</pallas_src>

<mosaic_0001>
module attributes {stable_mosaic.version = 11 : i64} {
  func.func @_astar_kernel(%arg0: memref<2xi32, #tpu.memory_space<smem>>, %arg1: memref<128xf32, #tpu.memory_space<smem>>, %arg2: memref<1x128xf32, #tpu.memory_space<vmem>>, %arg3: memref<128x256xf32, #tpu.memory_space<vmem>>, %arg4: memref<1x128xf32, #tpu.memory_space<vmem>>, %arg5: memref<1x128xi32, #tpu.memory_space<vmem>>) attributes {dimension_semantics = [], scalar_prefetch = 0 : i64, scratch_operands = 0 : i64, tpu.core_type = #tpu.core_type<tc>} {
    %c0 = arith.constant 0 : index
    %0 = memref.load %arg0[%c0] : memref<2xi32, #tpu.memory_space<smem>>
    %c1 = arith.constant 1 : index
    %1 = memref.load %arg0[%c1] : memref<2xi32, #tpu.memory_space<smem>>
    %2 = tpu.iota {dimensions = array<i32: 1>} : vector<1x128xi32>
    %3 = vector.broadcast %1 : i32 to vector<1x128xi32>
    %4 = arith.cmpi eq, %2, %3 : vector<1x128xi32>
    %5 = arith.extui %4 : vector<1x128xi1> to vector<1x128xi32>
    %6 = arith.sitofp %5 : vector<1x128xi32> to vector<1x128xf32>
    %c0_0 = arith.constant 0 : index
    %c0_1 = arith.constant 0 : index
    %7 = vector.load %arg2[%c0_0, %c0_1] : memref<1x128xf32, #tpu.memory_space<vmem>>, vector<1x128xf32>
    %cst = arith.constant 5.000000e-01 : f32
    %8 = vector.broadcast %cst : f32 to vector<1x128xf32>
    %9 = arith.mulf %8, %7 : vector<1x128xf32>
    %10 = vector.broadcast %0 : i32 to vector<1x128xi32>
    %11 = arith.cmpi eq, %2, %10 : vector<1x128xi32>
    %12 = arith.extui %11 : vector<1x128xi1> to vector<1x128xi32>
    %13 = arith.sitofp %12 : vector<1x128xi32> to vector<1x128xf32>
    %cst_2 = arith.constant 0.000000e+00 : f32
    %14 = vector.broadcast %cst_2 : f32 to vector<1x128xf32>
    %15 = arith.index_cast %0 : i32 to index
    %c0_3 = arith.constant 0 : index
    %16 = vector.load %arg3[%15, %c0_3] : memref<128x256xf32, #tpu.memory_space<vmem>>, vector<1x256xf32>
    %17 = vector.extract_strided_slice %16 {offsets = [0, 128], sizes = [1, 128], strides = [1, 1]} : vector<1x256xf32> to vector<1x128xf32>
    %cst_4 = arith.constant 0.000000e+00 : f32
    %18 = vector.broadcast %cst_4 : f32 to vector<1x128xf32>
    %19 = arith.sitofp %1 : i32 to f32
    %20 = vector.broadcast %19 : f32 to vector<1x128xf32>
    %21 = arith.addf %18, %20 : vector<1x128xf32>
    %c0_i32 = arith.constant 0 : i32
    %false = arith.constant false
    %22:6 = scf.while (%arg6 = %c0_i32, %arg7 = %13, %arg8 = %14, %arg9 = %17, %arg10 = %21, %arg11 = %false) : (i32, vector<1x128xf32>, vector<1x128xf32>, vector<1x128xf32>, vector<1x128xf32>, i1) -> (i32, vector<1x128xf32>, vector<1x128xf32>, vector<1x128xf32>, vector<1x128xf32>, i1) {
      %c32_i32 = arith.constant 32 : i32
      %35 = arith.cmpi slt, %arg6, %c32_i32 : i32
      %true = arith.constant true
      %36 = arith.xori %arg11, %true : i1
      %37 = arith.andi %35, %36 : i1
      scf.condition(%37) %arg6, %arg7, %arg8, %arg9, %arg10, %arg11 : i32, vector<1x128xf32>, vector<1x128xf32>, vector<1x128xf32>, vector<1x128xf32>, i1
    } do {
    ^bb0(%arg6: i32, %arg7: vector<1x128xf32>, %arg8: vector<1x128xf32>, %arg9: vector<1x128xf32>, %arg10: vector<1x128xf32>, %arg11: i1):
      %cst_12 = arith.constant 5.000000e-01 : f32
      %35 = vector.broadcast %cst_12 : f32 to vector<1x128xf32>
      %36 = arith.mulf %35, %arg9 : vector<1x128xf32>
      %37 = arith.addf %36, %9 : vector<1x128xf32>
      %cst_13 = arith.constant 0.000000e+00 : f32
      %38 = vector.broadcast %cst_13 : f32 to vector<1x128xf32>
      %39 = arith.cmpf ogt, %arg7, %38 : vector<1x128xf32>
      %cst_14 = arith.constant 0x7F800000 : f32
      %40 = vector.broadcast %cst_14 : f32 to vector<1x128xf32>
      %41 = arith.select %39, %37, %40 : vector<1x128xi1>, vector<1x128xf32>
      %42 = vector.shape_cast %41 : vector<1x128xf32> to vector<1x1x128xf32>
      %cst_15 = arith.constant dense<0x7F800000> : vector<1xf32>
      %43 = vector.multi_reduction <minimumf>, %42, %cst_15 [1, 2] : vector<1x1x128xf32> to vector<1xf32>
      %44 = vector.shape_cast %43 : vector<1xf32> to vector<1x1x1xf32>
      %45 = vector.extract %44[0, 0, 0] : f32 from vector<1x1x1xf32>
      %46 = vector.broadcast %45 : f32 to vector<1x128xf32>
      %47 = arith.cmpf oeq, %41, %46 : vector<1x128xf32>
      %c128_i32 = arith.constant 128 : i32
      %48 = vector.broadcast %c128_i32 : i32 to vector<1x128xi32>
      %49 = arith.select %47, %2, %48 : vector<1x128xi1>, vector<1x128xi32>
      %50 = vector.shape_cast %49 : vector<1x128xi32> to vector<1x1x128xi32>
      %cst_16 = arith.constant dense<2147483647> : vector<1xi32>
      %51 = vector.multi_reduction <minsi>, %50, %cst_16 [1, 2] : vector<1x1x128xi32> to vector<1xi32>
      %52 = vector.shape_cast %51 : vector<1xi32> to vector<1x1x1xi32>
      %53 = vector.extract %52[0, 0, 0] : i32 from vector<1x1x1xi32>
      %54 = vector.broadcast %53 : i32 to vector<1x128xi32>
      %55 = arith.cmpi eq, %2, %54 : vector<1x128xi32>
      %56 = arith.extui %55 : vector<1x128xi1> to vector<1x128xi32>
      %57 = arith.sitofp %56 : vector<1x128xi32> to vector<1x128xf32>
      %58 = arith.cmpi eq, %53, %1 : i32
      %cst_17 = arith.constant 1.000000e+00 : f32
      %59 = vector.broadcast %cst_17 : f32 to vector<1x128xf32>
      %60 = arith.subf %59, %57 : vector<1x128xf32>
      %61 = arith.mulf %arg7, %60 : vector<1x128xf32>
      %62 = arith.maximumf %arg8, %57 : vector<1x128xf32>
      %63 = arith.index_cast %53 : i32 to index
      %c0_18 = arith.constant 0 : index
      %64 = vector.load %arg3[%63, %c0_18] : memref<128x256xf32, #tpu.memory_space<vmem>>, vector<1x256xf32>
      %65 = vector.extract_strided_slice %64 {offsets = [0, 0], sizes = [1, 128], strides = [1, 1]} : vector<1x256xf32> to vector<1x128xf32>
      %66 = vector.extract_strided_slice %64 {offsets = [0, 128], sizes = [1, 128], strides = [1, 1]} : vector<1x256xf32> to vector<1x128xf32>
      %67 = arith.index_cast %53 : i32 to index
      %68 = memref.load %arg1[%67] : memref<128xf32, #tpu.memory_space<smem>>
      %cst_19 = arith.constant 5.000000e-01 : f32
      %69 = arith.mulf %cst_19, %68 : f32
      %70 = arith.subf %45, %69 : f32
      %cst_20 = arith.constant 2.000000e+00 : f32
      %71 = arith.mulf %70, %cst_20 : f32
      %cst_21 = arith.constant 1.000000e+00 : f32
      %72 = vector.broadcast %cst_21 : f32 to vector<1x128xf32>
      %73 = arith.subf %72, %61 : vector<1x128xf32>
      %74 = arith.mulf %65, %73 : vector<1x128xf32>
      %cst_22 = arith.constant 1.000000e+00 : f32
      %75 = vector.broadcast %cst_22 : f32 to vector<1x128xf32>
      %76 = arith.subf %75, %62 : vector<1x128xf32>
      %77 = arith.mulf %74, %76 : vector<1x128xf32>
      %78 = vector.broadcast %71 : f32 to vector<1x128xf32>
      %79 = arith.addf %78, %66 : vector<1x128xf32>
      %cst_23 = arith.constant 1.000000e+00 : f32
      %80 = vector.broadcast %cst_23 : f32 to vector<1x128xf32>
      %81 = arith.subf %80, %61 : vector<1x128xf32>
      %cst_24 = arith.constant 1.000000e+00 : f32
      %82 = vector.broadcast %cst_24 : f32 to vector<1x128xf32>
      %83 = arith.subf %82, %62 : vector<1x128xf32>
      %84 = arith.mulf %81, %83 : vector<1x128xf32>
      %85 = arith.cmpf ogt, %arg9, %79 : vector<1x128xf32>
      %86 = arith.extui %85 : vector<1x128xi1> to vector<1x128xi32>
      %87 = arith.sitofp %86 : vector<1x128xi32> to vector<1x128xf32>
      %88 = arith.mulf %61, %87 : vector<1x128xf32>
      %89 = arith.addf %84, %88 : vector<1x128xf32>
      %90 = arith.mulf %89, %77 : vector<1x128xf32>
      %cst_25 = arith.constant 0.000000e+00 : f32
      %91 = vector.broadcast %cst_25 : f32 to vector<1x128xf32>
      %92 = arith.cmpf ogt, %90, %91 : vector<1x128xf32>
      %93 = arith.select %92, %79, %arg9 : vector<1x128xi1>, vector<1x128xf32>
      %94 = arith.maximumf %61, %90 : vector<1x128xf32>
      %95 = arith.sitofp %53 : i32 to f32
      %96 = vector.broadcast %95 : f32 to vector<1x128xf32>
      %97 = arith.select %92, %96, %arg10 : vector<1x128xi1>, vector<1x128xf32>
      %c1_i32_26 = arith.constant 1 : i32
      %98 = arith.addi %arg6, %c1_i32_26 : i32
      scf.yield %98, %94, %62, %93, %97, %58 : i32, vector<1x128xf32>, vector<1x128xf32>, vector<1x128xf32>, vector<1x128xf32>, i1
    }
    %c1_i32 = arith.constant 1 : i32
    %23 = arith.subi %22#0, %c1_i32 : i32
    %c0_i32_5 = arith.constant 0 : i32
    %24 = arith.maxsi %23, %c0_i32_5 : i32
    %25 = arith.fptosi %6 : vector<1x128xf32> to vector<1x128xi32>
    %26 = arith.mulf %22#4, %6 : vector<1x128xf32>
    %27 = vector.shape_cast %26 : vector<1x128xf32> to vector<1x1x128xf32>
    %cst_6 = arith.constant dense<0.000000e+00> : vector<1xf32>
    %28 = vector.multi_reduction <add>, %27, %cst_6 [1, 2] : vector<1x1x128xf32> to vector<1xf32>
    %29 = vector.shape_cast %28 : vector<1xf32> to vector<1x1x1xf32>
    %30 = vector.extract %29[0, 0, 0] : f32 from vector<1x1x1xf32>
    %31 = arith.fptosi %30 : f32 to i32
    %c0_i32_7 = arith.constant 0 : i32
    %32:3 = scf.while (%arg6 = %c0_i32_7, %arg7 = %25, %arg8 = %31) : (i32, vector<1x128xi32>, i32) -> (i32, vector<1x128xi32>, i32) {
      %35 = arith.cmpi slt, %arg6, %24 : i32
      scf.condition(%35) %arg6, %arg7, %arg8 : i32, vector<1x128xi32>, i32
    } do {
    ^bb0(%arg6: i32, %arg7: vector<1x128xi32>, %arg8: i32):
      %35 = vector.broadcast %arg8 : i32 to vector<1x128xi32>
      %36 = arith.cmpi eq, %2, %35 : vector<1x128xi32>
      %c1_i32_12 = arith.constant 1 : i32
      %37 = vector.broadcast %c1_i32_12 : i32 to vector<1x128xi32>
      %38 = arith.select %36, %37, %arg7 : vector<1x128xi1>, vector<1x128xi32>
      %cst_13 = arith.constant 0.000000e+00 : f32
      %39 = vector.broadcast %cst_13 : f32 to vector<1x128xf32>
      %40 = arith.select %36, %22#4, %39 : vector<1x128xi1>, vector<1x128xf32>
      %41 = vector.shape_cast %40 : vector<1x128xf32> to vector<1x1x128xf32>
      %cst_14 = arith.constant dense<0.000000e+00> : vector<1xf32>
      %42 = vector.multi_reduction <add>, %41, %cst_14 [1, 2] : vector<1x1x128xf32> to vector<1xf32>
      %43 = vector.shape_cast %42 : vector<1xf32> to vector<1x1x1xf32>
      %44 = vector.extract %43[0, 0, 0] : f32 from vector<1x1x1xf32>
      %45 = arith.fptosi %44 : f32 to i32
      %c1_i32_15 = arith.constant 1 : i32
      %46 = arith.addi %arg6, %c1_i32_15 : i32
      scf.yield %46, %38, %45 : i32, vector<1x128xi32>, i32
    }
    %c0_8 = arith.constant 0 : index
    %c0_9 = arith.constant 0 : index
    %33 = vector.load %arg4[%c0_8, %c0_9] : memref<1x128xf32, #tpu.memory_space<vmem>>, vector<1x128xf32>
    tpu.vector_store %arg4[%c0_8, %c0_9], %22#2 {strides = array<i32>} : memref<1x128xf32, #tpu.memory_space<vmem>>, vector<1x128xf32>,
    %c0_10 = arith.constant 0 : index
    %c0_11 = arith.constant 0 : index
    %34 = vector.load %arg5[%c0_10, %c0_11] : memref<1x128xi32, #tpu.memory_space<vmem>>, vector<1x128xi32>
    tpu.vector_store %arg5[%c0_10, %c0_11], %32#1 {strides = array<i32>} : memref<1x128xi32, #tpu.memory_space<vmem>>, vector<1x128xi32>,
    return
  }
}

</mosaic_0001>

<bundles_post_ra>
// kernel: tpu_custom_call.1
= control target key start
LH: loop header
LB: loop body
LE: loop exit
PB: predicated region body
PF: predicated region fallthrough
CT: control target
= control target key end

     0   :  { %11 = vsyncpa [#allocation5], 0  ;;  %s745_s0 = inlined_call_operand.hbm [shape: s32[2], index: 0, kind: input, shape index: {}]   ;;  %s746_s1 = inlined_call_operand.vmem [shape: f32[128], index: 1, kind: input, shape index: {}]   ;;  %s747_s2 = inlined_call_operand.vmem [shape: f32[1,128], index: 2, kind: input, shape index: {}]   ;;  %s748_s3 = inlined_call_operand.hbm [shape: f32[128,256], index: 3, kind: input, shape index: {}]   ;;  %s749_s4 = inlined_call_operand.hbm [shape: f32[1,128], index: 4, kind: output, shape index: {0}]   ;;  %s750_s5 = inlined_call_operand.hbm [shape: s32[1,128], index: 5, kind: output, shape index: {1}]  }
   0x1   :  { %12 = vsyncpa [#allocation6], 0 }
   0x2   :  { %13 = vsyncpa [#allocation3], 0 }
   0x3   :  { %14 = vsyncpa [#allocation4], 0 }
   0x4   :  { %15 = vsyncpa [#allocation11], 0  ;;  %s30_s20 = sshll.u32 %s746_s1, 4  ;;  %s589_s21 = smov [#allocation2]   ;;  %s31_s20 = int_to_ptr.vmem [resolvable:$true] %s30_s20 }
   0x5   :  { %23 = dma.hbm_to_smem %s745_s0, 16, %s589_s21, [#allocation5]  }
   0x6   :  { %s435_s24 = scalar_lea.vmem %s31_s20, 16  ;;  %p440_p1 = scmp.lt.s32.totalorder %s31_s20, %s31_s20 }
   0x7   :  { %p436_p0 = scmp.ne.s32.totalorder %s31_s20, %s435_s24  ;;  %p441_p2 = scmp.lt.s32.totalorder %s435_s24, %s435_s24 }
   0x9   :  { %p442_p3 = por %p441_p2, %p440_p1 }
   0xb   :  { %p443_p4 = pnand %p442_p3, %p436_p0 }
   0xd   :  { %446 = shalt.err (!%p443_p4)
}
   0xe   :  { %s590_s25 = smov [#allocation7]   ;;  %s591_s26 = smov [#allocation8]  }
   0xf   :  { %33 = dma.vmem_to_smem %s31_s20, 16, %s590_s25, [#allocation6]  }
  0x10   :  { %s41_s27 = sshll.u32 %s591_s26, 4  ;;  %s42_s27 = int_to_ptr.vmem [resolvable:$true] %s41_s27 }
  0x11   :  { %s455_s28 = scalar_lea.vmem %s42_s27, 4096  ;;  %p460_p6 = scmp.lt.s32.totalorder %s42_s27, %s42_s27 }
  0x12   :  { %p456_p5 = scmp.ne.s32.totalorder %s42_s27, %s455_s28  ;;  %p461_p7 = scmp.lt.s32.totalorder %s455_s28, %s455_s28 }
  0x14   :  { %p462_p8 = por %p461_p7, %p460_p6 }
  0x16   :  { %p463_p9 = pnand %p462_p8, %p456_p5 }
  0x18   :  { %466 = shalt.err (!%p463_p9)
}
  0x19   :  { %s592_s0 = smov 256   ;;  %s593_s1 = smov 16  }
  0x1a   :  { %47 = dma.hbm_to_vmem [thread:$0]  %s748_s3, 4096, %s42_s27, [#allocation3], %s592_s0, %s592_s0, %s593_s1  }
  0x1b   :  { %543 = dma.done.wait [#allocation5], 16  }
  0x1c   :  { %544 = vsyncadd [#allocation5], 4294967280 }
  0x1d   :  { %545 = dma.done.wait [#allocation6], 16  }
  0x1e   :  { %546 = vsyncadd [#allocation6], 4294967280 }
  0x1f   :  { %547 = dma.done.wait [#allocation3], 4096  }
  0x20   :  { %548 = vsyncadd [#allocation3], 4294963200 }
  0x21   :  { %57 = sfence }
  0x22   :  { %s58_s6 = sld [smem:[#allocation2]]  ;;  %v60_v0 = vlaneseq  ;;  %v66_v1 = vld [vmem:[%s747_s2] sm:$0x1]  ;;  %v594_v8 = vmov 0.0   ;;  %v656_v14 = vmov 0.0   ;;  %s660_s14 = smov 0  }
  0x23   :  { %s640_s9 = sld [smem:[#allocation2 + $0x1]]  ;;  %v642_v2 = vmul.f32 0.5, %v66_v1 }
  0x24   :  { %v644_v3 = vand.u32 127, %v60_v0  ;;  %v86_v4 = vshrl.u32 %v60_v0, 7 }
  0x26   :  { %v87_v7 = vsub.s32 1, %v86_v4 }
  0x28   :  { %v68_v5 = vstv %s58_s6  ;;  %s72_s3 = sshra.s32 %s58_s6, 3  ;;  %s75_s10 = sand.u32 7, %s58_s6 }
  0x29   :  { %v62_v6 = vstv %s640_s9  ;;  %vm69_vm0 = vcmp.eq.s32.totalorder %v644_v3, %v68_v5  ;;  %s316_s11 = sshll.u32 %s72_s3, 4  ;;  %s81_s12 = scvt.s32.f32 %s640_s9 }
  0x2a   :  { %vm63_vm1 = vcmp.eq.s32.totalorder %v644_v3, %v62_v6  ;;  %v304_v9 = vsel %vm69_vm0, 1.0, %v594_v8   ;;  %s78_s2 = sadd.s32 %s316_s11, %s75_s10 }
  0x2b   :  { %v650_v10 = vsel %vm63_vm1, 1.0, %v594_v8  ;;  %v82_v11 = vstv %s81_s12   ;;  %s79_s13 = scalar_lea.vmem [#allocation8], %s78_s2 }
  0x2c   :  { %v80_v12 = vld [vmem:[%s79_s13] ss:$8 sm:$0x3] }
  0x2d   :  { %v88_v13 = vrot.slane %v80_v12, %v87_v7  }
  0x2e LB: > { %v103_v15 = vmul.f32 0.5, %v559_v13  ;;  %vm105_vm2 = vcmp.gt.f32.partialorder %v567_v9, 0.0  ;;  %vm107_vm3 = vcmask 1040384   ;;  %s681_s14 = sadd.s32 1, %s571_s14   ;;  %v595_v47 = vmov 0.0   ;;  %s571_s14 = sphi %s660_s14, %s756_s14   ;;  %v567_v9 = vphi %v304_v9, %v185_v9   ;;  %v563_v14 = vphi %v656_v14, %v755_v14   ;;  %v559_v13 = vphi %v88_v13, %v184_v13   ;;  %v555_v11 = vphi %v82_v11, %v754_v11  }
  0x2f   : > { %s751_s16 = smov %s681_s14 }
  0x30   : > { %v104_v16 = vadd.f32 %v103_v15, %v642_v2  ;;  %p97_p10 = scmp.lt.s32.totalorder %s751_s16, 32  ;;  %s756_s14 = smov %s751_s16 }
  0x32   : > { %v106_v17 = vsel %vm105_vm2, %v104_v16, inf }
  0x33   : > { %v108_v18 = vsel %vm107_vm3, %v106_v17, inf }
  0x34   : > { %109 = vmin.xlane.f32.xlu0 %v108_v18 }
  0xbd   : > { %v110_v19 = vpop.xlane.xlu0 %109 }
  0xbe   : > { %v111_v20 = vrot.slane %v110_v19, 4 }
  0xc0   : > { %v112_v21 = vmin.f32 %v110_v19, %v111_v20 }
  0xc2   : > { %v113_v22 = vrot.slane %v112_v21, 2 }
  0xc4   : > { %v114_v23 = vmin.f32 %v112_v21, %v113_v22 }
  0xc6   : > { %v115_v24 = vrot.slane %v114_v23, 1 }
  0xc8   : > { %v116_v25 = vmin.f32 %v114_v23, %v115_v24 }
  0xca   : > { %326 = vpush %v116_v25 }
  0xfb   : > { %s676_s15 = spop %326 }
  0xfc   : > { %v118_v26 = vstv %s676_s15 }
  0xfd   : > { %vm119_vm4 = vcmp.eq.f32.partialorder %v106_v17, %v118_v26 }
  0xfe   : > { %v120_v27 = vsel %vm119_vm4, %v644_v3, 128 }
  0xff   : > { %v121_v28 = vsel %vm107_vm3, %v120_v27, 2147483647 }
 0x100   : > { %v123_v29 = vshra.s32 %v121_v28, 16  ;;  %v122_v31 = vand.u32 65535, %v121_v28 }
 0x102   : > { %v125_v30 = vcvt.s32.f32 %v123_v29  ;;  %v124_v33 = vcvt.s32.f32 %v122_v31 }
 0x104   : > { %126 = vmin.xlane.f32.xlu0 %v125_v30 }
 0x18d   : > { %v127_v32 = vpop.xlane.xlu0 %126 }
 0x18e   : > { %vm128_vm5 = vcmp.eq.f32.partialorder %v125_v30, %v127_v32  ;;  %v133_v35 = vcvt.f32.s32 %v127_v32 }
 0x18f   : > { %v129_v34 = vsel %vm128_vm5, %v124_v33, inf }
 0x190   : > { %130 = vmin.xlane.f32.xlu1 %v129_v34  ;;  %v134_v37 = vshll.u32 %v133_v35, 16 }
 0x219   : > { %v131_v36 = vpop.xlane.xlu1 %130 }
 0x21a   : > { %v132_v38 = vcvt.f32.s32 %v131_v36 }
 0x21c   : > { %v135_v39 = vadd.s32 %v134_v37, %v132_v38 }
 0x21e   : > { %v136_v40 = vrot.slane %v135_v39, 4 }
 0x220   : > { %vm137_vm6 = vcmp.lt.s32.totalorder %v135_v39, %v136_v40 }
 0x221   : > { %v138_v41 = vsel %vm137_vm6, %v135_v39, %v136_v40 }
 0x222   : > { %v139_v42 = vrot.slane %v138_v41, 2 }
 0x224   : > { %vm140_vm7 = vcmp.lt.s32.totalorder %v138_v41, %v139_v42 }
 0x225   : > { %v141_v43 = vsel %vm140_vm7, %v138_v41, %v139_v42 }
 0x226   : > { %v142_v44 = vrot.slane %v141_v43, 1 }
 0x228   : > { %vm143_vm8 = vcmp.lt.s32.totalorder %v141_v43, %v142_v44 }
 0x229   : > { %v144_v45 = vsel %vm143_vm8, %v141_v43, %v142_v44 }
 0x22a   : > { %328 = vpush %v144_v45 }
 0x25b   : > { %s683_s17 = spop %328 }
 0x25c   : > { %v146_v46 = vstv %s683_s17  ;;  %s154_s18 = sshra.s32 %s683_s17, 3  ;;  %s157_s19 = sand.u32 7, %s683_s17 }
 0x25d   : > { %vm147_vm9 = vcmp.eq.s32.totalorder %v644_v3, %v146_v46  ;;  %s317_s20 = sshll.u32 %s154_s18, 4  ;;  %s163_s21 = sld [smem:[#allocation7 + %s683_s17]] }
 0x25e   : > { %v307_v48 = vsel %vm147_vm9, 1.0, %v595_v47  ;;  %s160_s22 = sadd.s32 %s317_s20, %s157_s19  ;;  %s186_s27 = scvt.s32.f32 %s683_s17 }
 0x25f   : > { %v151_v49 = vsub.f32 1.0, %v307_v48  ;;  %s161_s24 = scalar_lea.vmem [#allocation8], %s160_s22  ;;  %v692_v14 = vmax.f32 %v563_v14, %v307_v48   ;;  %p311_p11 = scmp.ne.s32.totalorder %s683_s17, %s640_s9 }
 0x260   : > { %v162_v51 = vld [vmem:[%s161_s24] ss:$8 sm:$0x3]  ;;  %v187_v1 = vstv %s186_s27 }
 0x261   : > { %v152_v50 = vmul.f32 %v567_v9, %v151_v49  ;;  %v752_v52 = vmov %v692_v14  ;;  %v173_v54 = vrot.slane %v162_v51, 1  ;;  %p99_p12 = pnand %p311_p11, %p97_p10 }
 0x262   : > { %v169_v58 = vsub.f32 1.0, %v752_v52  ;;  %v755_v14 = vmov %v752_v52  ;;  %s312_s28 = sadd.s32 (%p99_p12), 4294967295, %s751_s16  ;;  %v330_v5 = vtrunc.f32 (%p99_p12), %v650_v10 }
 0x263   : > { %s164_s23 = smul.f32 0.5, %s163_s21  ;;  %v167_v53 = vsub.f32 1.0, %v152_v50  ;;  %p191_p13 = scmp.gt.s32.totalorder (%p99_p12), %s312_s28, 0 }
 0x264   :  { %v331_v7 = vcvt.f32.s32 (%p99_p12), %v330_v5   ;;  %p321_p1 = scmp.le.s32.totalorder (%p99_p12), %s312_s28, 0 }
 0x265   : > { %s165_s25 = ssub.f32 %s676_s15, %s164_s23  ;;  %v168_v57 = vmul.f32 %v167_v53, %v162_v51  ;;  %v176_v60 = vmul.f32 %v169_v58, %v167_v53 }
 0x267   : > { %s166_s26 = smul.f32 2.0, %s165_s25  ;;  %v170_v62 = vmul.f32 %v169_v58, %v168_v57 }
 0x269   : > { %v171_v55 = vstv %s166_s26 }
 0x26a   : > { %v175_v56 = vadd.f32 %v173_v54, %v171_v55 }
 0x26c   : > { %vm177_vm10 = vcmp.gt.f32.partialorder %v559_v13, %v175_v56 }
 0x26d   : > { %v310_v59 = vsel %vm177_vm10, 1.0, %v595_v47 }
 0x26e   : > { %v180_v61 = vmul.f32 %v310_v59, %v152_v50 }
 0x270   : > { %v181_v63 = vadd.f32 %v180_v61, %v176_v60 }
 0x272   : > { %v182_v0 = vmul.f32 %v181_v63, %v170_v62 }
 0x273   :  { %102 = sbr.rel (!%p99_p12) target bundleno = 46 (0x2e), region = 72 }
 0x274   : > { %vm183_vm11 = vcmp.gt.f32.partialorder %v182_v0, 0.0  ;;  %v185_v9 = vmax.f32 %v152_v50, %v182_v0  }
 0x275   : > { %v184_v13 = vsel %vm183_vm11, %v175_v56, %v559_v13   ;;  %v699_v11 = vsel %vm183_vm11, %v187_v1, %v555_v11  }
 0x276   : > { %v753_v4 = vmov %v699_v11 }
 0x277   : > { %v754_v11 = vmov %v753_v4  ;;  %v194_v6 = vmul.f32 (%p99_p12), %v650_v10, %v753_v4  ;;  %v585_v10 = vmov (%p99_p12), %v331_v7  }
 0x278   :  { %s722_s0 = scalar_select %p191_p13, %s312_s28, 0 }
 0x279   :  { %v196_v8 = vsel %vm107_vm3, %v194_v6, 0.0  ;;  %s726_s7 = smov (!%p321_p1), 0  }
 0x27a   :  { %197 = vadd.xlane.f32.xlu0 %v196_v8 }
 0x303   :  { %v198_v12 = vpop.xlane.xlu0 %197 }
 0x304   :  { %v199_v15 = vrot.slane %v198_v12, 4 }
 0x306   :  { %v200_v9 = vadd.f32 %v199_v15, %v198_v12 }
 0x308   :  { %v201_v16 = vrot.slane %v200_v9, 2 }
 0x30a   :  { %v202_v17 = vadd.f32 %v201_v16, %v200_v9 }
 0x30c   :  { %v203_v18 = vrot.slane %v202_v17, 1 }
 0x30e   :  { %v204_v2 = vadd.f32 %v203_v18, %v202_v17 }
 0x310   :  { %332 = vpush %v204_v2 }
 0x341   :  { %s333_s1 = spop %332  ;;  %295 = sbr.rel (%p321_p1) target bundleno = 1047 (0x417), region = 77 }
 0x342   :  { %p334_p0 = scmp.lt.s32.totalorder %s333_s1, 0  ;;  %s335_s29 = sceil.f32 %s333_s1 }
 0x343   :  { %s336_s30 = sfloor.f32 %s333_s1 }
 0x344   :  { %s758_s29 = smov (!%p334_p0, %s335_s29), %s336_s30 }
 0x345   :  { %s338_s6 = scvt.f32.s32 %s758_s29  }
 0x346   :  { %v577_v11 = vmov %v331_v7  }
 0x347 LB: > { %v215_v13 = vstv %s575_s6  ;;  %s230_s7 = sadd.s32 1, %s583_s7   ;;  %s583_s7 = sphi %s726_s7, %s230_s7   ;;  %v579_v11 = vphi %v577_v11, %v578_v11   ;;  %s575_s6 = sphi %s338_s6, %s345_s6  }
 0x348   : > { %vm216_vm12 = vcmp.eq.s32.totalorder %v644_v3, %v215_v13  ;;  %p315_p3 = scmp.ge.s32.totalorder %s230_s7, %s722_s0 }
 0x349   : > { %v217_v14 = vsel %vm216_vm12, 1, %v579_v11   ;;  %v218_v19 = vsel %vm216_vm12, %v753_v4, 0.0 }
 0x34a   : > { %v219_v20 = vsel %vm107_vm3, %v218_v19, 0.0  ;;  %v578_v11 = vmov %v217_v14   ;;  %v586_v10 = vmov (%p315_p3), %v217_v14  }
 0x34b   : > { %220 = vadd.xlane.f32.xlu0 %v219_v20 }
 0x3d4   : > { %v221_v21 = vpop.xlane.xlu0 %220 }
 0x3d5   : > { %v222_v22 = vrot.slane %v221_v21, 4 }
 0x3d7   : > { %v223_v23 = vadd.f32 %v222_v22, %v221_v21 }
 0x3d9   : > { %v224_v24 = vrot.slane %v223_v23, 2 }
 0x3db   : > { %v225_v25 = vadd.f32 %v224_v24, %v223_v23 }
 0x3dd   : > { %v226_v26 = vrot.slane %v225_v25, 1 }
 0x3df   : > { %v227_v27 = vadd.f32 %v226_v26, %v225_v25 }
 0x3e1   : > { %339 = vpush %v227_v27 }
 0x412   : > { %s340_s8 = spop %339  ;;  %214 = sbr.rel (!%p315_p3) target bundleno = 839 (0x347), region = 83 }
 0x413   : > { %p341_p2 = scmp.lt.s32.totalorder %s340_s8, 0  ;;  %s342_s9 = sceil.f32 %s340_s8 }
 0x414   : > { %s343_s3 = sfloor.f32 %s340_s8 }
 0x415   : > { %s760_s9 = smov (!%p341_p2, %s342_s9), %s343_s3 }
 0x416   : > { %s345_s6 = scvt.f32.s32 %s760_s9  }
 0x417 PF:  { %231 = vst [vmem:[#allocation9] sm:$0x1] %v752_v52  ;;  %232 = vst [vmem:[#allocation10] sm:$0x1] %v587_v10  ;;  %s596_s10 = smov [#allocation9]   ;;  %s597_s12 = smov [#allocation10]   ;;  %v587_v10 = vphi %v585_v10, %v586_v10  }
 0x418   :  { %s239_s11 = sshll.u32 %s596_s10, 4  ;;  %s249_s2 = sshll.u32 %s597_s12, 4  ;;  %s240_s11 = int_to_ptr.vmem [resolvable:$true] %s239_s11  ;;  %s250_s2 = int_to_ptr.vmem [resolvable:$true] %s249_s2 }
 0x419   :  { %s467_s13 = scalar_lea.vmem %s240_s11, 16  ;;  %s471_s14 = scalar_lea.vmem %s240_s11, 32 }
 0x41a   :  { %p468_p4 = scmp.ne.s32.totalorder %s240_s11, %s467_s13  ;;  %p472_p5 = scmp.lt.s32.totalorder %s240_s11, %s240_s11 }
 0x41b   :  { %p473_p6 = scmp.lt.s32.totalorder %s471_s14, %s467_s13 }
 0x41d   :  { %p474_p7 = por %p473_p6, %p472_p5 }
 0x41f   :  { %p475_p8 = pnand %p474_p7, %p468_p4 }
 0x421   :  { %478 = shalt.err (!%p475_p8)
}
 0x422   :  { %242 = dma.vmem_to_hbm [thread:$0]  %s240_s11, 16, %s749_s4, [#allocation4]  }
 0x423   :  { %s487_s17 = scalar_lea.vmem %s250_s2, 16  ;;  %s491_s18 = scalar_lea.vmem %s250_s2, 32 }
 0x424   :  { %p488_p9 = scmp.ne.s32.totalorder %s250_s2, %s487_s17  ;;  %p492_p10 = scmp.lt.s32.totalorder %s250_s2, %s250_s2 }
 0x425   :  { %p493_p11 = scmp.lt.s32.totalorder %s491_s18, %s487_s17 }
 0x427   :  { %p494_p12 = por %p493_p11, %p492_p10 }
 0x429   :  { %p495_p13 = pnand %p494_p12, %p488_p9 }
 0x42b   :  { %498 = shalt.err (!%p495_p13)
}
 0x42c   :  { %252 = dma.vmem_to_hbm [thread:$0]  %s250_s2, 16, %s750_s5, [#allocation11]  }
 0x42d   :  { %549 = dma.done.wait [#allocation4], 16  }
 0x42e   :  { %550 = vsyncadd [#allocation4], 4294967280 }
 0x42f   :  { %551 = dma.done.wait [#allocation11], 16  }
 0x430   :  { %552 = vsyncadd [#allocation11], 4294967280 }
 0x431   :  { %259 = vsyncpa [#allocation3], 1 }
 0x432   :  { %260 = vsyncpa [#allocation4], 1 }
 0x433   :  { %261 = vsyncpa [#allocation11], 1 }
 0x434   :  { %262 = vsyncpa [#allocation5], 1 }
 0x435   :  { %263 = vsyncpa [#allocation6], 1 }

</bundles_post_ra>
